<compile_context>
chip_gen: v7x
topology: tpu7x:2x2x1
jax: 0.10.0
libtpu: 0.0.40
codegen_flags: <defaults>
</compile_context>

<pallas_src>
import functools

import jax
import jax.numpy as jnp
from jax.experimental import pallas as pl
from jax.experimental.pallas import tpu as pltpu


def _mlp_kernel(x_ref, p_ref, o_ref):
    x = x_ref[...]                         # (1, bt)   batch on lanes
    p = p_ref[...]                         # (32, 64)  packed weights/biases

    # Unpack (static slices of a tiny VMEM-resident tile).
    w2 = p[:, 0:16]                        # (32, 16)  layer-2 weight
    w3 = p[0:16, 16:48]                    # (16, 32)  layer-3 weight
    w1 = p[0:16, 48:49]                    # (16, 1)   layer-1 weight column
    b1 = p[0:16, 49:50]                    # (16, 1)
    b2 = p[:, 50:51]                       # (32, 1)
    b3 = p[0:16, 51:52]                    # (16, 1)
    w4 = p[0:16, 52:53]                    # (16, 1)   layer-4 weight row (as column)
    b4 = p[0:1, 53:54]                     # (1, 1)

    # Layer 1 (in_features = 1): K=1 matmul -> VPU broadcast FMA.
    h = jnp.tanh(w1 * x + b1)                                               # (16, bt)
    # Layers 2 & 3: real MXU matmuls, batch on the N (lane) dimension.
    h = jnp.tanh(jnp.dot(w2, h, preferred_element_type=jnp.float32) + b2)   # (32, bt)
    h = jnp.tanh(jnp.dot(w3, h, preferred_element_type=jnp.float32) + b3)   # (16, bt)
    # Layer 4 (out_features = 1): M=1 matmul -> VPU mul + sublane reduce.
    out = jnp.sum(w4 * h, axis=0, keepdims=True) + b4                       # (1, bt)
    o_ref[...] = out.astype(o_ref.dtype)


def _pack_params(params):
    """Pack all weights/biases into a single (32, 64) f32 tile.

    Params follow the PyTorch nn.Linear convention: w_l is (out, in), b_l is (out,).
    """
    P = jnp.zeros((32, 64), jnp.float32)
    P = P.at[:, 0:16].set(params["w2"])            # (32, 16)
    P = P.at[0:16, 16:48].set(params["w3"])        # (16, 32)
    P = P.at[0:16, 48].set(params["w1"][:, 0])     # (16,)
    P = P.at[0:16, 49].set(params["b1"])           # (16,)
    P = P.at[:, 50].set(params["b2"])              # (32,)
    P = P.at[0:16, 51].set(params["b3"])           # (16,)
    P = P.at[0:16, 52].set(params["w4"][0, :])     # (16,)
    P = P.at[0, 53].set(params["b4"][0])           # scalar
    return P


@functools.partial(jax.jit, static_argnames=("batch_tile",))
def simple_nn_forward(x, params, *, batch_tile=1024):
    """x: (B, 1) float32.  params: PyTorch-convention weights.  Returns (B, 1)."""
    B = x.shape[0]
    xt = x.reshape(1, B).astype(jnp.float32)       # batch -> lane (last) axis

    # Always pad the lane axis to a multiple of 128 so stores are unmasked and
    # lane-dense; larger batches additionally tile at `batch_tile`.
    Bp = max(128, pl.cdiv(B, 128) * 128)
    if Bp <= batch_tile:
        tile = Bp                                   # single grid step
    else:
        assert batch_tile % 128 == 0, "batch_tile must be a multiple of 128"
        tile = batch_tile
        Bp = pl.cdiv(B, tile) * tile
    if Bp != B:
        xt = jnp.pad(xt, ((0, 0), (0, Bp - B)))

    packed = _pack_params(params)
    grid = (Bp // tile,)

    out_t = pl.pallas_call(
        _mlp_kernel,
        out_shape=jax.ShapeDtypeStruct((1, Bp), jnp.float32),
        grid_spec=pltpu.PrefetchScalarGridSpec(
            num_scalar_prefetch=0,
            grid=grid,
            in_specs=[
                pl.BlockSpec((1, tile), lambda i: (0, i)),   # x tile (lane-dense)
                pl.BlockSpec((32, 64), lambda i: (0, 0)),    # packed params (resident)
            ],
            out_specs=pl.BlockSpec((1, tile), lambda i: (0, i)),
        ),
        compiler_params=pltpu.CompilerParams(
            dimension_semantics=("parallel",)),              # megacore-shardable
    )(xt, packed)

    return out_t[:, :B].reshape(B, 1).astype(x.dtype)


def init_params(key):
    """Deterministic init matching nn.Linear shapes (PyTorch (out, in) layout)."""
    dims = [(16, 1), (32, 16), (16, 32), (1, 16)]            # (out, in)
    params = {}
    for idx, (fan_out, fan_in) in enumerate(dims, start=1):
        key, kw, kb = jax.random.split(key, 3)
        bound = 1.0 / (fan_in ** 0.5)
        params[f"w{idx}"] = jax.random.uniform(
            kw, (fan_out, fan_in), jnp.float32, minval=-bound, maxval=bound)
        params[f"b{idx}"] = jax.random.uniform(
            kb, (fan_out,), jnp.float32, minval=-bound, maxval=bound)
    return params


def reference_forward(x, params):
    h = jnp.tanh(x @ params["w1"].T + params["b1"])
    h = jnp.tanh(h @ params["w2"].T + params["b2"])
    h = jnp.tanh(h @ params["w3"].T + params["b3"])
    return h @ params["w4"].T + params["b4"]


if __name__ == "__main__":
    key = jax.random.PRNGKey(0)
    key, kx1, kx2 = jax.random.split(key, 3)
    params = init_params(key)

    # Small batch: single grid step (batch padded to 128 lanes, pad sliced off).
    x_small = jax.random.normal(kx1, (16, 1), jnp.float32)
    out_small = jax.block_until_ready(simple_nn_forward(x_small, params))
    ref_small = reference_forward(x_small, params)
    assert out_small.shape == (16, 1)
    assert jnp.allclose(out_small, ref_small, atol=1e-5, rtol=1e-5)

    # Larger batch: exercises padding (1000 -> 1024) on the single-tile path.
    x_big = jax.random.normal(kx2, (1000, 1), jnp.float32)
    out_big = jax.block_until_ready(simple_nn_forward(x_big, params))
    ref_big = reference_forward(x_big, params)
    assert out_big.shape == (1000, 1)
    assert jnp.allclose(out_big, ref_big, atol=1e-5, rtol=1e-5)

    # Multi-tile path: 3000 -> 3072 lanes, 3 grid steps of 1024.
    key, kx3 = jax.random.split(key)
    x_tiled = jax.random.normal(kx3, (3000, 1), jnp.float32)
    out_tiled = jax.block_until_ready(simple_nn_forward(x_tiled, params))
    ref_tiled = reference_forward(x_tiled, params)
    assert out_tiled.shape == (3000, 1)
    assert jnp.allclose(out_tiled, ref_tiled, atol=1e-5, rtol=1e-5)

    print("KERNEL_OK")
</pallas_src>

<mosaic_0001>
module attributes {stable_mosaic.version = 11 : i64} {
  func.func @_mlp_kernel(%arg0: i32, %arg1: memref<1x128xf32, #tpu.memory_space<vmem>>, %arg2: memref<32x64xf32, #tpu.memory_space<vmem>>, %arg3: memref<1x128xf32, #tpu.memory_space<vmem>>) attributes {dimension_semantics = [#tpu.dimension_semantics<parallel>], iteration_bounds = array<i64: 1>, scalar_prefetch = 0 : i64, scratch_operands = 0 : i64, tpu.core_type = #tpu.core_type<tc>, window_params = [{transform_indices = @transform_0, window_bounds = array<i64: 1, 128>}, {pipeline_mode = #tpu.pipeline_mode<synchronous>, transform_indices = @transform_1, window_bounds = array<i64: 32, 64>}, {transform_indices = @transform_2, window_bounds = array<i64: 1, 128>}]} {
    %c0 = arith.constant 0 : index
    %c0_0 = arith.constant 0 : index
    %0 = vector.load %arg1[%c0, %c0_0] : memref<1x128xf32, #tpu.memory_space<vmem>>, vector<1x128xf32>
    %c0_1 = arith.constant 0 : index
    %c0_2 = arith.constant 0 : index
    %1 = vector.load %arg2[%c0_1, %c0_2] : memref<32x64xf32, #tpu.memory_space<vmem>>, vector<32x64xf32>
    %2 = vector.extract_strided_slice %1 {offsets = [0, 0], sizes = [32, 16], strides = [1, 1]} : vector<32x64xf32> to vector<32x16xf32>
    %3 = vector.extract_strided_slice %1 {offsets = [0, 16], sizes = [16, 32], strides = [1, 1]} : vector<32x64xf32> to vector<16x32xf32>
    %4 = vector.extract_strided_slice %1 {offsets = [0, 48], sizes = [16, 1], strides = [1, 1]} : vector<32x64xf32> to vector<16x1xf32>
    %5 = vector.extract_strided_slice %1 {offsets = [0, 49], sizes = [16, 1], strides = [1, 1]} : vector<32x64xf32> to vector<16x1xf32>
    %6 = vector.extract_strided_slice %1 {offsets = [0, 50], sizes = [32, 1], strides = [1, 1]} : vector<32x64xf32> to vector<32x1xf32>
    %7 = vector.extract_strided_slice %1 {offsets = [0, 51], sizes = [16, 1], strides = [1, 1]} : vector<32x64xf32> to vector<16x1xf32>
    %8 = vector.extract_strided_slice %1 {offsets = [0, 52], sizes = [16, 1], strides = [1, 1]} : vector<32x64xf32> to vector<16x1xf32>
    %9 = vector.extract_strided_slice %1 {offsets = [0, 53], sizes = [1, 1], strides = [1, 1]} : vector<32x64xf32> to vector<1x1xf32>
    %10 = vector.broadcast %4 : vector<16x1xf32> to vector<16x128xf32>
    %11 = vector.broadcast %0 : vector<1x128xf32> to vector<16x128xf32>
    %12 = arith.mulf %10, %11 : vector<16x128xf32>
    %13 = vector.broadcast %5 : vector<16x1xf32> to vector<16x128xf32>
    %14 = arith.addf %12, %13 : vector<16x128xf32>
    %15 = math.tanh %14 : vector<16x128xf32>
    %cst = arith.constant dense<0.000000e+00> : vector<32x128xf32>
    %16 = tpu.matmul %2, %15, %cst {dimension_numbers = #tpu.dot_dimension_numbers<[1], [0], [0], [1], [0, 0, 1, 1], [], []>} : vector<32x16xf32>, vector<16x128xf32>, vector<32x128xf32> -> vector<32x128xf32>
    %17 = vector.broadcast %6 : vector<32x1xf32> to vector<32x128xf32>
    %18 = arith.addf %16, %17 : vector<32x128xf32>
    %19 = math.tanh %18 : vector<32x128xf32>
    %cst_3 = arith.constant dense<0.000000e+00> : vector<16x128xf32>
    %20 = tpu.matmul %3, %19, %cst_3 {dimension_numbers = #tpu.dot_dimension_numbers<[1], [0], [0], [1], [0, 0, 1, 1], [], []>} : vector<16x32xf32>, vector<32x128xf32>, vector<16x128xf32> -> vector<16x128xf32>
    %21 = vector.broadcast %7 : vector<16x1xf32> to vector<16x128xf32>
    %22 = arith.addf %20, %21 : vector<16x128xf32>
    %23 = math.tanh %22 : vector<16x128xf32>
    %24 = vector.broadcast %8 : vector<16x1xf32> to vector<16x128xf32>
    %25 = arith.mulf %24, %23 : vector<16x128xf32>
    %cst_4 = arith.constant dense<0.000000e+00> : vector<128xf32>
    %26 = vector.multi_reduction <add>, %25, %cst_4 [0] : vector<16x128xf32> to vector<128xf32>
    %27 = vector.shape_cast %26 : vector<128xf32> to vector<1x128xf32>
    %28 = vector.broadcast %9 : vector<1x1xf32> to vector<1x128xf32>
    %29 = arith.addf %27, %28 : vector<1x128xf32>
    %c0_5 = arith.constant 0 : index
    %c0_6 = arith.constant 0 : index
    %30 = vector.load %arg3[%c0_5, %c0_6] : memref<1x128xf32, #tpu.memory_space<vmem>>, vector<1x128xf32>
    tpu.vector_store %arg3[%c0_5, %c0_6], %29 {strides = array<i32>} : memref<1x128xf32, #tpu.memory_space<vmem>>, vector<1x128xf32>,
    return
  }
  func.func @transform_0(%arg0: i32) -> (i32, i32) {
    %c0_i32 = arith.constant 0 : i32
    %c0_i32_0 = arith.constant 0 : i32
    return %c0_i32, %arg0 : i32, i32
  }
  func.func @transform_1(%arg0: i32) -> (i32, i32) {
    %c0_i32 = arith.constant 0 : i32
    %c0_i32_0 = arith.constant 0 : i32
    %c0_i32_1 = arith.constant 0 : i32
    return %c0_i32, %c0_i32_0 : i32, i32
  }
  func.func @transform_2(%arg0: i32) -> (i32, i32) {
    %c0_i32 = arith.constant 0 : i32
    %c0_i32_0 = arith.constant 0 : i32
    return %c0_i32, %arg0 : i32, i32
  }
}

</mosaic_0001>

<bundles_post_ra>
// kernel: simple_nn_forward.1
= control target key start
LH: loop header
LB: loop body
LE: loop exit
PB: predicated region body
PF: predicated region fallthrough
CT: control target
= control target key end

     0   :  { %v366_v0 = vmov 49   ;;  %v367_v1 = vmov 48   ;;  %vm64_vm0 = vcmask 130048   ;;  %v368_v4 = vmov 50   ;;  %s369_s17 = smov 112   ;;  %s412_s1 = inlined_call_operand.vmem [shape: f32[32,64], index: 1, kind: input, shape index: {}]   ;;  %s413_s0 = inlined_call_operand.vmem [shape: f32[1,128], index: 0, kind: input, shape index: {}]   ;;  %s414_s2 = inlined_call_operand.vmem [shape: f32[1,128], index: 2, kind: output, shape index: {}]  }
   0x1   :  { %343 = vset.pattern.permute.xlu1 %v366_v0  ;;  %342 = vset.pattern.permute.xlu0 %v367_v1  ;;  %v12_v2 = vld [vmem:[%s412_s1] sm:$0xff]  ;;  %v13_v3 = vld [vmem:[%s412_s1 + $0x8] sm:$0xff]  ;;  %v14_v5 = vld [vmem:[%s412_s1 + $0x10] sm:$0xff]  ;;  %vm174_vm1 = vcmask 261120   ;;  %v370_v22 = vmov 51   ;;  %v371_v23 = vmov 52  }
   0x2   :  { %35 = vperm.xlu1 %343, %v12_v2   ;;  %18 = vperm.xlu0 %342, %v12_v2   ;;  %v15_v6 = vld [vmem:[%s412_s1 + $0x18] sm:$0xff]  ;;  %v283_v7 = vld [vmem:[%s413_s0] ss:$0 sm:$0xff]  ;;  %v372_v24 = vmov 53  }
   0x3   :  { %306 = vmatprep.mubr.msk.f32.mxu0 %vm64_vm0, %v12_v2 }
   0x6   :  { %39 = vperm.xlu1 %343, %v13_v3   ;;  %23 = vperm.xlu0 %342, %v13_v3  }
   0xa   :  { %345 = vset.pattern.permute.xlu1 %v368_v4  ;;  %344 = vset.pattern.permute.xlu0 %v368_v4 }
   0xb   :  { %51 = vperm.xlu1 %345, %v13_v3   ;;  %47 = vperm.xlu0 %344, %v12_v2  }
   0xf   :  { %56 = vperm.xlu1 %345, %v14_v5   ;;  %61 = vperm.xlu0 %344, %v15_v6  }
  0x13   :  { %170 = vrot.lane.b32.xlu1 %v12_v2, %s369_s17  ;;  %172 = vrot.lane.b32.xlu0 %v13_v3, %s369_s17 }
  0x14   :  { %347 = vset.pattern.permute.xlu0 %v370_v22  ;;  %346 = vset.pattern.permute.xlu1 %v370_v22 }
  0x17   :  { %167 = vperm.xlu0 %347, %v13_v3   ;;  %163 = vperm.xlu1 %346, %v12_v2  }
  0x1b   :  { %348 = vset.pattern.permute.xlu1 %v371_v23  ;;  %349 = vset.pattern.permute.xlu0 %v372_v24 }
  0x1c   :  { %257 = vperm.xlu1 %348, %v12_v2   ;;  %274 = vperm.xlu0 %349, %v12_v2  }
  0x20   :  { %261 = vperm.xlu1 %348, %v13_v3  }
  0x81   :  { %v36_v8 = vpop.permute.xlu1 %35  ;;  %v19_v9 = vpop.permute.xlu0 %18 }
  0x82   :  { %v32_v10 = vmul.f32 %v283_v7, %v19_v9 }
  0x84   :  { %v42_v11 = vadd.f32 %v36_v8, %v32_v10 }
  0x85   :  { %v24_v12 = vpop.permute.xlu0 %23  ;;  %v40_v14 = vpop.permute.xlu1 %39 }
  0x86   :  { %v33_v13 = vmul.f32 %v283_v7, %v24_v12  ;;  %350 = vtanh.f32 %v42_v11 }
  0x88   :  { %v43_v15 = vadd.f32 %v40_v14, %v33_v13 }
  0x8a   :  { %352 = vtanh.f32 %v43_v15  ;;  %v52_v19 = vpop.permute.xlu1 %51  ;;  %v48_v25 = vpop.permute.xlu0 %47 }
  0x8e   :  { %v57_v20 = vpop.permute.xlu1 %56  ;;  %v62_v30 = vpop.permute.xlu0 %61 }
  0x90   :  { %v351_v16 = vpop.eup %350 }
  0x92   :  { %v171_v21 = vpop.permute.xlu1 %170  ;;  %v173_v41 = vpop.permute.xlu0 %172 }
  0x93   :  { %320 = vmatprep.mubr.msk.f32.mxu1 %vm174_vm1, %v171_v21 }
  0x94   :  { %v353_v17 = vpop.eup %352 }
  0x95   :  { %v323_v18 = vpack.c.bf16 %v353_v17, %v351_v16 }
  0x96   :  { %v168_v42 = vpop.permute.xlu0 %167  ;;  %v164_v43 = vpop.permute.xlu1 %163 }
  0x97   :  { %324 = vmatprep.subr.bf16.mxu0 %v323_v18 }
  0x98   :  { %326 = vmatpush3.bf16.msra.mxu0 %v323_v18 }
  0x9b   :  { %307 = vmatmul.mubr.msk.f32.vlgmr.msra.gmra.mrb[0].mxu0 %vm64_vm0, %v13_v3  ;;  %v258_v48 = vpop.permute.xlu1 %257  ;;  %v275_v60 = vpop.permute.xlu0 %274 }
  0x9c   :  { %309 = vmatprep.mubr.msk.f32.mxu0 %vm64_vm0, %v14_v5 }
  0x9f   :  { %310 = vmatmul.mubr.msk.f32.gmra.mrb[2].mxu0 %vm64_vm0, %v15_v6  ;;  %v262_v50 = vpop.permute.xlu1 %261 }
 0x16e   :  { %v308_v26 = vpop.f32.mrb[0].mxu0 }
 0x16f   :  { %v145_v27 = vadd.f32 %v308_v26, %v52_v19  ;;  %v139_v28 = vpop.f32.mrb[1].mxu0 }
 0x170   :  { %v140_v29 = vadd.f32 %v139_v28, %v48_v25 }
 0x171   :  { %354 = vtanh.f32 %v145_v27 }
 0x172   :  { %356 = vtanh.f32 %v140_v29  ;;  %v311_v31 = vpop.f32.mrb[2].mxu0 }
 0x173   :  { %v155_v32 = vadd.f32 %v311_v31, %v62_v30  ;;  %v149_v33 = vpop.f32.mrb[3].mxu0 }
 0x174   :  { %v150_v34 = vadd.f32 %v149_v33, %v57_v20 }
 0x175   :  { %358 = vtanh.f32 %v155_v32 }
 0x176   :  { %360 = vtanh.f32 %v150_v34 }
 0x17b   :  { %v355_v35 = vpop.eup %354 }
 0x17c   :  { %v357_v36 = vpop.eup %356 }
 0x17d   :  { %v327_v37 = vpack.c.bf16 %v355_v35, %v357_v36 }
 0x17f   :  { %v359_v38 = vpop.eup %358  ;;  %328 = vmatprep.subr.bf16.mxu1 %v327_v37 }
 0x180   :  { %v361_v39 = vpop.eup %360  ;;  %330 = vmatpush3.bf16.msra.mxu1 %v327_v37 }
 0x181   :  { %v331_v40 = vpack.c.bf16 %v359_v38, %v361_v39 }
 0x183   :  { %332 = vmatprep.subr.bf16.mxu1 %v331_v40 }
 0x184   :  { %334 = vmatpush3.bf16.msra.mxu1 %v331_v40 }
 0x187   :  { %321 = vmatmul.mubr.msk.f32.vlgmr.msra.gmra.mrb[0].mxu1 %vm174_vm1, %v173_v41 }
 0x25a   :  { %v322_v44 = vpop.f32.mrb[0].mxu1 }
 0x25b   :  { %v251_v45 = vadd.f32 %v322_v44, %v168_v42  ;;  %v245_v46 = vpop.f32.mrb[1].mxu1 }
 0x25c   :  { %v246_v47 = vadd.f32 %v245_v46, %v164_v43 }
 0x25d   :  { %362 = vtanh.f32 %v251_v45 }
 0x25e   :  { %364 = vtanh.f32 %v246_v47 }
 0x267   :  { %v363_v49 = vpop.eup %362 }
 0x268   :  { %v365_v51 = vpop.eup %364  ;;  %v265_v52 = vmul.f32 %v363_v49, %v262_v50 }
 0x269   :  { %v264_v53 = vmul.f32 %v365_v51, %v258_v48 }
 0x26b   :  { %v266_v54 = vadd.f32 %v265_v52, %v264_v53 }
 0x26d   :  { %v267_v55 = vrot.slane %v266_v54, 4 }
 0x26f   :  { %v268_v56 = vadd.f32 %v267_v55, %v266_v54 }
 0x271   :  { %v269_v57 = vrot.slane %v268_v56, 2 }
 0x273   :  { %v270_v58 = vadd.f32 %v269_v57, %v268_v56 }
 0x275   :  { %v271_v59 = vrot.slane %v270_v58, 1 }
 0x277   :  { %v272_v61 = vadd.f32 %v271_v59, %v270_v58 }
 0x279   :  { %v277_v62 = vadd.f32 %v275_v60, %v272_v61 }
 0x27b   :  { %278 = vst [vmem:[%s414_s2] sm:$0x1] %v277_v62 }

</bundles_post_ra>
